<compile_context>
chip_gen: v6e
topology: v6e:2x2x1
jax: 0.10.0
libtpu: 0.0.40
codegen_flags: <defaults>
</compile_context>

<pallas_src>
import math

import jax
import jax.numpy as jnp
from jax.experimental import pallas as pl
from jax.experimental.pallas import tpu as pltpu


_OUT_LANES = 128  # lane-dense output slab; wrapper slices column 0.


def _cdiv(a, b):
    return -(-a // b)


def _round_up(a, m):
    return _cdiv(a, m) * m


# ----------------------------------------------------------------------------
# Fused kernel builder: streaming pooling + concat-free staging + 3-layer MLP.
# ----------------------------------------------------------------------------
def _build_kernel(pooled_info, last_info, batch, out_lanes):
    """pooled_info: ((offset, channels, true_n_points), ...); last_info: (offset, channels)."""
    n_pooled = len(pooled_info)
    last_off, last_c = last_info

    def kernel(*refs):
        feat_refs = refs[:n_pooled]                      # bf16 [B, tile_i, C_i] point tiles
        last_ref = refs[n_pooled]                        # bf16 [B, C_last] (already pooled)
        (w1_ref, b1_ref, w2_ref, b2_ref,
         w3_ref, b3_ref) = refs[n_pooled + 1:n_pooled + 7]
        o_ref = refs[n_pooled + 7]                       # [B, out_lanes]
        xcat_ref = refs[n_pooled + 8]                    # f32 [B, 960] scratch accumulator

        k = pl.program_id(0)
        last_step = pl.num_programs(0) - 1

        @pl.when(k == 0)
        def _init():
            xcat_ref[...] = jnp.zeros_like(xcat_ref)

        # Streaming global-average pooling: per-tile sublane reduce (XLU) in f32.
        # The 1/N_i mean scale is folded into every partial sum so the staged
        # values stay O(1) before the bf16 cast that feeds the MXU (zero-padded
        # rows contribute nothing; N_i is the true point count).
        for (off, c, n_true), f_ref in zip(pooled_info, feat_refs):
            part = jnp.sum(f_ref[...].astype(jnp.float32), axis=1)       # [B, C_i]
            part = part * jnp.float32(1.0 / n_true)
            xcat_ref[:, off:off + c] = xcat_ref[:, off:off + c] + part

        @pl.when(k == last_step)
        def _epilogue():
            # Implicit concat: the already-pooled feature drops into its slot.
            xcat_ref[:, last_off:last_off + last_c] = last_ref[...].astype(jnp.float32)

            # Layer 1: ONE K=960 bf16 MXU pass (f32 accumulate) + f32 bias/ReLU.
            x = xcat_ref[...].astype(jnp.bfloat16)                        # [B, 960]
            h = jnp.dot(x, w1_ref[...],
                        preferred_element_type=jnp.float32) + b1_ref[...]
            h = jnp.maximum(h, 0.0)
            # Layer 2: bf16 operands, f32 accumulate (explicit, not DEFAULT-precision f32).
            h = jnp.dot(h.astype(jnp.bfloat16), w2_ref[...],
                        preferred_element_type=jnp.float32) + b2_ref[...]
            h = jnp.maximum(h, 0.0)
            # Layer 3 (64 -> 1): keep off the MXU (VPU mul + lane reduce); write a
            # lane-dense [B, 128] block instead of a masked 1-wide store.
            y = jnp.sum(h * w3_ref[...], axis=-1, keepdims=True) + b3_ref[...]   # [B, 1]
            o_ref[...] = jnp.broadcast_to(y, (batch, out_lanes)).astype(o_ref.dtype)

    return kernel


# ----------------------------------------------------------------------------
# MeanFCDor forward: one fused pallas_call for the whole module.
# ----------------------------------------------------------------------------
def mean_fc_dor_forward(mid_feature, params, *, points_tile=512):
    """Fused MeanFCDor forward.

    points_tile sizes the per-step points block.  Guidance: ~256-512 on v7x
    (64 MiB VMEM, 32 MiB scoped default), 1024-2048 on v6e (raise
    vmem_limit_bytes if needed), halve on v5e (16 MiB scoped default).
    """
    *pooled_feats, last_feat = mid_feature
    B = last_feat.shape[0]
    w1, b1, w2, b2, w3, b3 = params

    seg_c = [f.shape[2] for f in pooled_feats] + [last_feat.shape[1]]
    n_seg = len(seg_c)
    total_c = sum(seg_c)
    assert total_c == w1.shape[0] == 960, f"expected 960 channels, got {total_c}"

    # Segment reorder: 128-lane-aligned widths first so every slot offset in the
    # staged [B, 960] feature is lane aligned; permute W1's rows on the host to match.
    order = sorted(range(n_seg), key=lambda i: seg_c[i] % 128 != 0)
    orig_off = [0]
    for c in seg_c[:-1]:
        orig_off.append(orig_off[-1] + c)
    new_off, acc = {}, 0
    for i in order:
        new_off[i] = acc
        acc += seg_c[i]
    w1_perm = jnp.concatenate(
        [w1[orig_off[i]:orig_off[i] + seg_c[i]] for i in order], axis=0)

    # Points-axis grid: shared tile count, per-feature tile size (multiple of 8),
    # zero padding (does not perturb the sum; 1/N uses the true N_i).
    max_n = max(f.shape[1] for f in pooled_feats)
    num_tiles = max(1, _cdiv(max_n, points_tile))
    padded_feats, tiles = [], []
    for f in pooled_feats:
        n = f.shape[1]
        t = _round_up(_cdiv(n, num_tiles), 8)
        fb = f.astype(jnp.bfloat16)                      # halve the dominant HBM stream
        pad = t * num_tiles - n
        if pad:
            fb = jnp.pad(fb, ((0, 0), (0, pad), (0, 0)))
        padded_feats.append(fb)
        tiles.append(t)

    pooled_info = tuple(
        (new_off[i], seg_c[i], pooled_feats[i].shape[1]) for i in range(n_seg - 1))
    last_info = (new_off[n_seg - 1], seg_c[-1])

    kernel = _build_kernel(pooled_info, last_info, B, _OUT_LANES)

    # Kernel-side params: bf16 W1 (permuted rows) / bf16 W2 halve the weight DMA;
    # biases and the 64-wide layer-3 weight row stay f32.
    k_params = (
        w1_perm.astype(jnp.bfloat16),
        b1.astype(jnp.float32).reshape(1, -1),
        w2.astype(jnp.bfloat16),
        b2.astype(jnp.float32).reshape(1, -1),
        w3.astype(jnp.float32).reshape(1, -1),           # [1, 64]
        b3.astype(jnp.float32).reshape(1, 1),
    )

    const_map = lambda k: (0, 0)
    feat_specs = [
        pl.BlockSpec((B, t, c), lambda k: (0, k, 0))
        for t, c in zip(tiles, seg_c[:-1])
    ]
    weight_specs = [pl.BlockSpec(p.shape, const_map) for p in k_params]
    in_specs = feat_specs + [pl.BlockSpec((B, seg_c[-1]), const_map)] + weight_specs

    out = pl.pallas_call(
        kernel,
        out_shape=jax.ShapeDtypeStruct((B, _OUT_LANES), last_feat.dtype),
        grid_spec=pltpu.PrefetchScalarGridSpec(
            num_scalar_prefetch=0,
            grid=(num_tiles,),
            in_specs=in_specs,
            out_specs=pl.BlockSpec((B, _OUT_LANES), const_map),
            scratch_shapes=[pltpu.VMEM((B, total_c), jnp.float32)],
        ),
        compiler_params=pltpu.CompilerParams(
            dimension_semantics=("arbitrary",)),
    )(*padded_feats, last_feat.astype(jnp.bfloat16), *k_params)
    return out[:, :1]


# ----------------------------------------------------------------------------
# Deterministic parameter initialization (PyTorch nn.Linear default: U(-k, k),
# k = 1/sqrt(fan_in)).  Weights stored [in, out]; biases stored [1, out].
# ----------------------------------------------------------------------------
def init_params(key):
    dims = [(960, 64), (64, 64), (64, 1)]
    params = []
    for fan_in, fan_out in dims:
        kw, kb, key = jax.random.split(key, 3)
        k = 1.0 / math.sqrt(fan_in)
        w = jax.random.uniform(kw, (fan_in, fan_out), jnp.float32, -k, k)
        b = jax.random.uniform(kb, (1, fan_out), jnp.float32, -k, k)
        params += [w, b]
    return tuple(params)


# ----------------------------------------------------------------------------
# Pure-JAX f32 reference for verification.
# ----------------------------------------------------------------------------
def reference_forward(mid_feature, params):
    pooled = [jnp.mean(f, axis=1) for f in mid_feature[:-1]]
    pooled.append(mid_feature[-1])
    x = jnp.concatenate(pooled, axis=1)
    w1, b1, w2, b2, w3, b3 = params
    h = jnp.maximum(x @ w1 + b1, 0.0)
    h = jnp.maximum(h @ w2 + b2, 0.0)
    return h @ w3 + b3


if __name__ == "__main__":
    key = jax.random.PRNGKey(0)
    k0, k1, k2, k3, kp = jax.random.split(key, 5)

    B = 2
    # Channel widths of the concatenated features must sum to 960
    # (the hard-coded in_features of the first Linear).
    mid_feature = [
        jax.random.normal(k0, (B, 16, 256), jnp.float32),  # sparse feat 0 -> pooled
        jax.random.normal(k1, (B, 12, 256), jnp.float32),  # sparse feat 1 -> pooled
        jax.random.normal(k2, (B, 8, 192), jnp.float32),   # sparse feat 2 -> pooled
        jax.random.normal(k3, (B, 256), jnp.float32),      # already-pooled last feature
    ]
    params = init_params(kp)

    # points_tile=8 so the demo shapes exercise the 2-step points grid
    # (accumulator init / streaming accumulate / epilogue paths all run).
    pred = mean_fc_dor_forward(mid_feature, params, points_tile=8)
    pred = jax.block_until_ready(pred)

    ref = reference_forward(mid_feature, params)
    assert pred.shape == (B, 1)
    # bf16 features + bf16 W1/W2 on the MXU (f32 accumulation, O(1)-scaled means).
    assert jnp.allclose(pred, ref, atol=2e-2, rtol=2e-2), (pred, ref)

    print("KERNEL_OK")
</pallas_src>

<mosaic_0001>
module attributes {stable_mosaic.version = 11 : i64} {
  func.func @kernel(%arg0: i32, %arg1: memref<2x8x256xbf16, #tpu.memory_space<vmem>>, %arg2: memref<2x8x256xbf16, #tpu.memory_space<vmem>>, %arg3: memref<2x8x192xbf16, #tpu.memory_space<vmem>>, %arg4: memref<2x256xbf16, #tpu.memory_space<vmem>>, %arg5: memref<960x64xbf16, #tpu.memory_space<vmem>>, %arg6: memref<1x64xf32, #tpu.memory_space<vmem>>, %arg7: memref<64x64xbf16, #tpu.memory_space<vmem>>, %arg8: memref<1x64xf32, #tpu.memory_space<vmem>>, %arg9: memref<1x64xf32, #tpu.memory_space<vmem>>, %arg10: memref<1x1xf32, #tpu.memory_space<vmem>>, %arg11: memref<2x128xf32, #tpu.memory_space<vmem>>, %arg12: memref<2x960xf32, #tpu.memory_space<vmem>>) attributes {dimension_semantics = [#tpu.dimension_semantics<arbitrary>], iteration_bounds = array<i64: 2>, scalar_prefetch = 0 : i64, scratch_operands = 1 : i64, tpu.core_type = #tpu.core_type<tc>, window_params = [{transform_indices = @transform_0, window_bounds = array<i64: 2, 8, 256>}, {transform_indices = @transform_1, window_bounds = array<i64: 2, 8, 256>}, {transform_indices = @transform_2, window_bounds = array<i64: 2, 8, 192>}, {pipeline_mode = #tpu.pipeline_mode<synchronous>, transform_indices = @transform_3, window_bounds = array<i64: 2, 256>}, {pipeline_mode = #tpu.pipeline_mode<synchronous>, transform_indices = @transform_4, window_bounds = array<i64: 960, 64>}, {pipeline_mode = #tpu.pipeline_mode<synchronous>, transform_indices = @transform_5, window_bounds = array<i64: 1, 64>}, {pipeline_mode = #tpu.pipeline_mode<synchronous>, transform_indices = @transform_6, window_bounds = array<i64: 64, 64>}, {pipeline_mode = #tpu.pipeline_mode<synchronous>, transform_indices = @transform_7, window_bounds = array<i64: 1, 64>}, {pipeline_mode = #tpu.pipeline_mode<synchronous>, transform_indices = @transform_8, window_bounds = array<i64: 1, 64>}, {pipeline_mode = #tpu.pipeline_mode<synchronous>, transform_indices = @transform_9, window_bounds = array<i64: 1, 1>}, {pipeline_mode = #tpu.pipeline_mode<synchronous>, transform_indices = @transform_10, window_bounds = array<i64: 2, 128>}]} {
    %c0_i32 = arith.constant 0 : i32
    %0 = arith.cmpi eq, %arg0, %c0_i32 : i32
    %1 = arith.extui %0 : i1 to i32
    %c0_i32_0 = arith.constant 0 : i32
    %2 = arith.cmpi ne, %1, %c0_i32_0 : i32
    scf.if %2 {
      %cst_25 = arith.constant 0.000000e+00 : f32
      %30 = vector.broadcast %cst_25 : f32 to vector<2x960xf32>
      %c0_26 = arith.constant 0 : index
      %c0_27 = arith.constant 0 : index
      %31 = vector.load %arg12[%c0_26, %c0_27] : memref<2x960xf32, #tpu.memory_space<vmem>>, vector<2x960xf32>
      tpu.vector_store %arg12[%c0_26, %c0_27], %30 {strides = array<i32>} : memref<2x960xf32, #tpu.memory_space<vmem>>, vector<2x960xf32>,
    } else {
    }
    %c0 = arith.constant 0 : index
    %c0_1 = arith.constant 0 : index
    %c0_2 = arith.constant 0 : index
    %3 = vector.load %arg1[%c0, %c0_1, %c0_2] : memref<2x8x256xbf16, #tpu.memory_space<vmem>>, vector<2x8x256xbf16>
    %4 = arith.extf %3 : vector<2x8x256xbf16> to vector<2x8x256xf32>
    %cst = arith.constant dense<0.000000e+00> : vector<2x256xf32>
    %5 = vector.multi_reduction <add>, %4, %cst [1] : vector<2x8x256xf32> to vector<2x256xf32>
    %cst_3 = arith.constant 6.250000e-02 : f32
    %6 = vector.broadcast %cst_3 : f32 to vector<2x256xf32>
    %7 = arith.mulf %5, %6 : vector<2x256xf32>
    %c0_4 = arith.constant 0 : index
    %c0_5 = arith.constant 0 : index
    %8 = vector.load %arg12[%c0_4, %c0_5] : memref<2x960xf32, #tpu.memory_space<vmem>>, vector<2x256xf32>
    %9 = arith.addf %8, %7 : vector<2x256xf32>
    %c0_6 = arith.constant 0 : index
    %c0_7 = arith.constant 0 : index
    %10 = vector.load %arg12[%c0_6, %c0_7] : memref<2x960xf32, #tpu.memory_space<vmem>>, vector<2x256xf32>
    tpu.vector_store %arg12[%c0_6, %c0_7], %9 {strides = array<i32>} : memref<2x960xf32, #tpu.memory_space<vmem>>, vector<2x256xf32>,
    %c0_8 = arith.constant 0 : index
    %c0_9 = arith.constant 0 : index
    %c0_10 = arith.constant 0 : index
    %11 = vector.load %arg2[%c0_8, %c0_9, %c0_10] : memref<2x8x256xbf16, #tpu.memory_space<vmem>>, vector<2x8x256xbf16>
    %12 = arith.extf %11 : vector<2x8x256xbf16> to vector<2x8x256xf32>
    %cst_11 = arith.constant dense<0.000000e+00> : vector<2x256xf32>
    %13 = vector.multi_reduction <add>, %12, %cst_11 [1] : vector<2x8x256xf32> to vector<2x256xf32>
    %cst_12 = arith.constant 0.0833333358 : f32
    %14 = vector.broadcast %cst_12 : f32 to vector<2x256xf32>
    %15 = arith.mulf %13, %14 : vector<2x256xf32>
    %c0_13 = arith.constant 0 : index
    %c256 = arith.constant 256 : index
    %16 = vector.load %arg12[%c0_13, %c256] : memref<2x960xf32, #tpu.memory_space<vmem>>, vector<2x256xf32>
    %17 = arith.addf %16, %15 : vector<2x256xf32>
    %c0_14 = arith.constant 0 : index
    %c256_15 = arith.constant 256 : index
    %18 = vector.load %arg12[%c0_14, %c256_15] : memref<2x960xf32, #tpu.memory_space<vmem>>, vector<2x256xf32>
    tpu.vector_store %arg12[%c0_14, %c256_15], %17 {strides = array<i32>} : memref<2x960xf32, #tpu.memory_space<vmem>>, vector<2x256xf32>,
    %c0_16 = arith.constant 0 : index
    %c0_17 = arith.constant 0 : index
    %c0_18 = arith.constant 0 : index
    %19 = vector.load %arg3[%c0_16, %c0_17, %c0_18] : memref<2x8x192xbf16, #tpu.memory_space<vmem>>, vector<2x8x192xbf16>
    %20 = arith.extf %19 : vector<2x8x192xbf16> to vector<2x8x192xf32>
    %cst_19 = arith.constant dense<0.000000e+00> : vector<2x192xf32>
    %21 = vector.multi_reduction <add>, %20, %cst_19 [1] : vector<2x8x192xf32> to vector<2x192xf32>
    %cst_20 = arith.constant 1.250000e-01 : f32
    %22 = vector.broadcast %cst_20 : f32 to vector<2x192xf32>
    %23 = arith.mulf %21, %22 : vector<2x192xf32>
    %c0_21 = arith.constant 0 : index
    %c768 = arith.constant 768 : index
    %24 = vector.load %arg12[%c0_21, %c768] : memref<2x960xf32, #tpu.memory_space<vmem>>, vector<2x192xf32>
    %25 = arith.addf %24, %23 : vector<2x192xf32>
    %c0_22 = arith.constant 0 : index
    %c768_23 = arith.constant 768 : index
    %26 = vector.load %arg12[%c0_22, %c768_23] : memref<2x960xf32, #tpu.memory_space<vmem>>, vector<2x192xf32>
    tpu.vector_store %arg12[%c0_22, %c768_23], %25 {strides = array<i32>} : memref<2x960xf32, #tpu.memory_space<vmem>>, vector<2x192xf32>,
    %c1_i32 = arith.constant 1 : i32
    %27 = arith.cmpi eq, %arg0, %c1_i32 : i32
    %28 = arith.extui %27 : i1 to i32
    %c0_i32_24 = arith.constant 0 : i32
    %29 = arith.cmpi ne, %28, %c0_i32_24 : i32
    scf.if %29 {
      %c0_25 = arith.constant 0 : index
      %c0_26 = arith.constant 0 : index
      %30 = vector.load %arg4[%c0_25, %c0_26] : memref<2x256xbf16, #tpu.memory_space<vmem>>, vector<2x256xbf16>
      %31 = arith.extf %30 : vector<2x256xbf16> to vector<2x256xf32>
      %c0_27 = arith.constant 0 : index
      %c512 = arith.constant 512 : index
      %32 = vector.load %arg12[%c0_27, %c512] : memref<2x960xf32, #tpu.memory_space<vmem>>, vector<2x256xf32>
      tpu.vector_store %arg12[%c0_27, %c512], %31 {strides = array<i32>} : memref<2x960xf32, #tpu.memory_space<vmem>>, vector<2x256xf32>,
      %c0_28 = arith.constant 0 : index
      %c0_29 = arith.constant 0 : index
      %33 = vector.load %arg12[%c0_28, %c0_29] : memref<2x960xf32, #tpu.memory_space<vmem>>, vector<2x960xf32>
      %34 = arith.truncf %33 : vector<2x960xf32> to vector<2x960xbf16>
      %c0_30 = arith.constant 0 : index
      %c0_31 = arith.constant 0 : index
      %35 = vector.load %arg5[%c0_30, %c0_31] : memref<960x64xbf16, #tpu.memory_space<vmem>>, vector<960x64xbf16>
      %cst_32 = arith.constant dense<0.000000e+00> : vector<2x64xf32>
      %36 = tpu.matmul %34, %35, %cst_32 {dimension_numbers = #tpu.dot_dimension_numbers<[1], [0], [0], [1], [0, 0, 1, 1], [], []>} : vector<2x960xbf16>, vector<960x64xbf16>, vector<2x64xf32> -> vector<2x64xf32>
      %c0_33 = arith.constant 0 : index
      %c0_34 = arith.constant 0 : index
      %37 = vector.load %arg6[%c0_33, %c0_34] : memref<1x64xf32, #tpu.memory_space<vmem>>, vector<1x64xf32>
      %38 = vector.broadcast %37 : vector<1x64xf32> to vector<2x64xf32>
      %39 = arith.addf %36, %38 : vector<2x64xf32>
      %cst_35 = arith.constant 0.000000e+00 : f32
      %40 = vector.broadcast %cst_35 : f32 to vector<2x64xf32>
      %41 = arith.maximumf %39, %40 : vector<2x64xf32>
      %42 = arith.truncf %41 : vector<2x64xf32> to vector<2x64xbf16>
      %c0_36 = arith.constant 0 : index
      %c0_37 = arith.constant 0 : index
      %43 = vector.load %arg7[%c0_36, %c0_37] : memref<64x64xbf16, #tpu.memory_space<vmem>>, vector<64x64xbf16>
      %cst_38 = arith.constant dense<0.000000e+00> : vector<2x64xf32>
      %44 = tpu.matmul %42, %43, %cst_38 {dimension_numbers = #tpu.dot_dimension_numbers<[1], [0], [0], [1], [0, 0, 1, 1], [], []>} : vector<2x64xbf16>, vector<64x64xbf16>, vector<2x64xf32> -> vector<2x64xf32>
      %c0_39 = arith.constant 0 : index
      %c0_40 = arith.constant 0 : index
      %45 = vector.load %arg8[%c0_39, %c0_40] : memref<1x64xf32, #tpu.memory_space<vmem>>, vector<1x64xf32>
      %46 = vector.broadcast %45 : vector<1x64xf32> to vector<2x64xf32>
      %47 = arith.addf %44, %46 : vector<2x64xf32>
      %cst_41 = arith.constant 0.000000e+00 : f32
      %48 = vector.broadcast %cst_41 : f32 to vector<2x64xf32>
      %49 = arith.maximumf %47, %48 : vector<2x64xf32>
      %c0_42 = arith.constant 0 : index
      %c0_43 = arith.constant 0 : index
      %50 = vector.load %arg9[%c0_42, %c0_43] : memref<1x64xf32, #tpu.memory_space<vmem>>, vector<1x64xf32>
      %51 = vector.broadcast %50 : vector<1x64xf32> to vector<2x64xf32>
      %52 = arith.mulf %49, %51 : vector<2x64xf32>
      %cst_44 = arith.constant dense<0.000000e+00> : vector<2xf32>
      %53 = vector.multi_reduction <add>, %52, %cst_44 [1] : vector<2x64xf32> to vector<2xf32>
      %54 = vector.shape_cast %53 : vector<2xf32> to vector<2x1xf32>
      %c0_45 = arith.constant 0 : index
      %c0_46 = arith.constant 0 : index
      %55 = vector.load %arg10[%c0_45, %c0_46] : memref<1x1xf32, #tpu.memory_space<vmem>>, vector<1x1xf32>
      %56 = vector.broadcast %55 : vector<1x1xf32> to vector<2x1xf32>
      %57 = arith.addf %54, %56 : vector<2x1xf32>
      %58 = vector.shape_cast %57 : vector<2x1xf32> to vector<2x1xf32>
      %59 = vector.broadcast %58 : vector<2x1xf32> to vector<2x128xf32>
      %c0_47 = arith.constant 0 : index
      %c0_48 = arith.constant 0 : index
      %60 = vector.load %arg11[%c0_47, %c0_48] : memref<2x128xf32, #tpu.memory_space<vmem>>, vector<2x128xf32>
      tpu.vector_store %arg11[%c0_47, %c0_48], %59 {strides = array<i32>} : memref<2x128xf32, #tpu.memory_space<vmem>>, vector<2x128xf32>,
    } else {
    }
    return
  }
  func.func @transform_0(%arg0: i32) -> (i32, i32, i32) {
    %c0_i32 = arith.constant 0 : i32
    %c0_i32_0 = arith.constant 0 : i32
    %c0_i32_1 = arith.constant 0 : i32
    return %c0_i32, %arg0, %c0_i32_0 : i32, i32, i32
  }
  func.func @transform_1(%arg0: i32) -> (i32, i32, i32) {
    %c0_i32 = arith.constant 0 : i32
    %c0_i32_0 = arith.constant 0 : i32
    %c0_i32_1 = arith.constant 0 : i32
    return %c0_i32, %arg0, %c0_i32_0 : i32, i32, i32
  }
  func.func @transform_2(%arg0: i32) -> (i32, i32, i32) {
    %c0_i32 = arith.constant 0 : i32
    %c0_i32_0 = arith.constant 0 : i32
    %c0_i32_1 = arith.constant 0 : i32
    return %c0_i32, %arg0, %c0_i32_0 : i32, i32, i32
  }
  func.func @transform_3(%arg0: i32) -> (i32, i32) {
    %c0_i32 = arith.constant 0 : i32
    %c0_i32_0 = arith.constant 0 : i32
    %c0_i32_1 = arith.constant 0 : i32
    return %c0_i32, %c0_i32_0 : i32, i32
  }
  func.func @transform_4(%arg0: i32) -> (i32, i32) {
    %c0_i32 = arith.constant 0 : i32
    %c0_i32_0 = arith.constant 0 : i32
    %c0_i32_1 = arith.constant 0 : i32
    return %c0_i32, %c0_i32_0 : i32, i32
  }
  func.func @transform_5(%arg0: i32) -> (i32, i32) {
    %c0_i32 = arith.constant 0 : i32
    %c0_i32_0 = arith.constant 0 : i32
    %c0_i32_1 = arith.constant 0 : i32
    return %c0_i32, %c0_i32_0 : i32, i32
  }
  func.func @transform_6(%arg0: i32) -> (i32, i32) {
    %c0_i32 = arith.constant 0 : i32
    %c0_i32_0 = arith.constant 0 : i32
    %c0_i32_1 = arith.constant 0 : i32
    return %c0_i32, %c0_i32_0 : i32, i32
  }
  func.func @transform_7(%arg0: i32) -> (i32, i32) {
    %c0_i32 = arith.constant 0 : i32
    %c0_i32_0 = arith.constant 0 : i32
    %c0_i32_1 = arith.constant 0 : i32
    return %c0_i32, %c0_i32_0 : i32, i32
  }
  func.func @transform_8(%arg0: i32) -> (i32, i32) {
    %c0_i32 = arith.constant 0 : i32
    %c0_i32_0 = arith.constant 0 : i32
    %c0_i32_1 = arith.constant 0 : i32
    return %c0_i32, %c0_i32_0 : i32, i32
  }
  func.func @transform_9(%arg0: i32) -> (i32, i32) {
    %c0_i32 = arith.constant 0 : i32
    %c0_i32_0 = arith.constant 0 : i32
    %c0_i32_1 = arith.constant 0 : i32
    return %c0_i32, %c0_i32_0 : i32, i32
  }
  func.func @transform_10(%arg0: i32) -> (i32, i32) {
    %c0_i32 = arith.constant 0 : i32
    %c0_i32_0 = arith.constant 0 : i32
    %c0_i32_1 = arith.constant 0 : i32
    return %c0_i32, %c0_i32_0 : i32, i32
  }
}

</mosaic_0001>

<bundles_post_ra>
// kernel: tpu_custom_call.1
= control target key start
LH: loop header
LB: loop body
LE: loop exit
PB: predicated region body
PF: predicated region fallthrough
CT: control target
= control target key end

     0   :  { %s2373_s0 = inlined_call_operand.vmem [shape: bf16[2,16,256], index: 0, kind: input, shape index: {}]   ;;  %s2374_s1 = inlined_call_operand.vmem [shape: bf16[2,16,256], index: 1, kind: input, shape index: {}]   ;;  %s2375_s2 = inlined_call_operand.vmem [shape: bf16[2,16,192], index: 2, kind: input, shape index: {}]   ;;  %s2376_s3 = inlined_call_operand.vmem [shape: bf16[2,256], index: 3, kind: input, shape index: {}]   ;;  %s2377_s4 = inlined_call_operand.vmem [shape: bf16[960,64], index: 4, kind: input, shape index: {}]   ;;  %s2378_s5 = inlined_call_operand.vmem [shape: f32[1,64], index: 5, kind: input, shape index: {}]   ;;  %s2379_s6 = inlined_call_operand.vmem [shape: bf16[64,64], index: 6, kind: input, shape index: {}]   ;;  %s2380_s7 = inlined_call_operand.vmem [shape: f32[1,64], index: 7, kind: input, shape index: {}]   ;;  %s2381_s8 = inlined_call_operand.vmem [shape: f32[1,64], index: 8, kind: input, shape index: {}]   ;;  %s2382_s9 = inlined_call_operand.<no memory space> [shape: f32[1,1], index: 9, kind: input, shape index: {}]   ;;  %s2383_s10 = inlined_call_operand.hbm [shape: f32[2,128], index: 10, kind: output, shape index: {}]  }
   0x1   :  { %v15_v0 = vstv %s2382_s9 }
   0x2   :  { %16 = vst [vmem:[#allocation3] sm:$0x1] %v15_v0 }
   0x3   :  { %17 = vsyncpa [#allocation8], 0  ;;  %s2036_s15 = smov 0   ;;  %s2038_s16 = smov 0  }
   0x4   :  { %s2040_s17 = smov 0  }
   0x5 LB: > { %s2052_s9 = sadd.s32 4294967295, %s1970_s17   ;;  %s2055_s18 = sadd.s32 1, %s1970_s17   ;;  %s1970_s17 = sphi %s2040_s17, %s2387_s17   ;;  %s1966_s16 = sphi %s2038_s16, %s2386_s16   ;;  %s1962_s15 = sphi %s2036_s15, %s2385_s15  }
   0x6   : > { %s27_s19 = ssub.s32 %s1970_s17, %s2055_s18  ;;  %s30_s20 = sadd.s32 1, %s1966_s16 }
   0x7   : > { %p28_p0 = scmp.eq.s32.totalorder %s27_s19, 0  ;;  %p37_p1 = scmp.ne.s32.totalorder %s1966_s16, %s1962_s15 }
   0x8   : > { %p38_p2 = scmp.eq.s32.totalorder %s1970_s17, 0  ;;  %p1641_p4 = scmp.ge.s32.totalorder %s1970_s17, 2 }
   0x9   : > { %s2064_s21 = scalar_select %p28_p0, %s1966_s16, %s30_s20  }
   0xa   : > { %p2066_p3 = por %p38_p2, %p37_p1  ;;  %304 = sbr.rel (%p1641_p4) target bundleno = 30 (0x1e), region = 44 }
   0xf   : > { %307 = sbr.rel (!%p2066_p3) target bundleno = 20 (0x14), region = 48  ;;  %s309_s23 = sand.u32 (%p2066_p3), 1, %s1966_s16  }
  0x10   : > { %s1731_s24 = sshll.u32 (%p2066_p3), %s1970_s17, 3  ;;  %s1642_s25 = sshll.u32 (%p2066_p3), %s309_s23, 4 }
  0x11   : > { %s314_s28 = scalar_lea.vmem (%p2066_p3), %s2373_s0, %s1731_s24  ;;  %s311_s29 = scalar_lea.vmem (%p2066_p3), [#allocation4], %s1642_s25 }
  0x12   : > { %v345_v1 = vld [vmem:[%s314_s28] sm:$0xff] (%p2066_p3)  ;;  %v347_v2 = vld [vmem:[%s314_s28 + $0x10] sm:$0xff] (%p2066_p3) }
  0x13   : > { %346 = vst [vmem:[%s311_s29] sm:$0xff] (%p2066_p3), %v345_v1  ;;  %348 = vst [vmem:[%s311_s29 + $0x8] sm:$0xff] (%p2066_p3), %v347_v2 }
  0x14 PF: > { %354 = sbr.rel (!%p2066_p3) target bundleno = 25 (0x19), region = 86  ;;  %s356_s30 = sand.u32 (%p2066_p3), 1, %s1966_s16  }
  0x15   : > { %s1732_s11 = sshll.u32 (%p2066_p3), %s1970_s17, 3  ;;  %s1645_s12 = sshll.u32 (%p2066_p3), %s356_s30, 4 }
  0x16   : > { %s361_s19 = scalar_lea.vmem (%p2066_p3), %s2374_s1, %s1732_s11  ;;  %s358_s20 = scalar_lea.vmem (%p2066_p3), [#allocation5], %s1645_s12 }
  0x17   : > { %v392_v3 = vld [vmem:[%s361_s19] sm:$0xff] (%p2066_p3)  ;;  %v394_v4 = vld [vmem:[%s361_s19 + $0x10] sm:$0xff] (%p2066_p3) }
  0x18   : > { %393 = vst [vmem:[%s358_s20] sm:$0xff] (%p2066_p3), %v392_v3  ;;  %395 = vst [vmem:[%s358_s20 + $0x8] sm:$0xff] (%p2066_p3), %v394_v4 }
  0x19 PF: > { %401 = sbr.rel (!%p2066_p3) target bundleno = 30 (0x1e), region = 124  ;;  %s403_s23 = sand.u32 (%p2066_p3), 1, %s1966_s16  }
  0x1a   : > { %s1733_s24 = sshll.u32 (%p2066_p3), %s1970_s17, 3  ;;  %s1648_s25 = sshll.u32 (%p2066_p3), %s403_s23, 4 }
  0x1b   : > { %s408_s28 = scalar_lea.vmem (%p2066_p3), %s2375_s2, %s1733_s24  ;;  %s405_s29 = scalar_lea.vmem (%p2066_p3), [#allocation6], %s1648_s25 }
  0x1c   : > { %v439_v5 = vld [vmem:[%s408_s28] sm:$0xff] (%p2066_p3)  ;;  %v441_v6 = vld [vmem:[%s408_s28 + $0x10] sm:$0xff] (%p2066_p3) }
  0x1d   : > { %440 = vst [vmem:[%s405_s29] sm:$0xff] (%p2066_p3), %v439_v5  ;;  %442 = vst [vmem:[%s405_s29 + $0x8] sm:$0xff] (%p2066_p3), %v441_v6 }
  0x1e PF: > { %p1651_p5 = scmp.ge.s32.totalorder %s1970_s17, 1  ;;  %p447_p6 = scmp.lt.s32.totalorder %s1970_s17, 3 }
  0x20   : > { %p448_p7 = pnand %p1651_p5, %p447_p6 }
  0x21   : > { %s454_s22 = sand.u32 (!%p448_p7), 1, %s1962_s15   ;;  %p1655_p8 = scmp.ne.s32.totalorder (!%p448_p7), %s2052_s9, 0 }
  0x22   : > { %451 = sbr.rel (%p448_p7) target bundleno = 861 (0x35d), region = 162  ;;  %s2095_s30 = sshll.u32 (!%p448_p7), %s454_s22, 4 }
  0x23   : > { %s456_s11 = scalar_lea.vmem (!%p448_p7), [#allocation4], %s2095_s30  ;;  %s463_s12 = scalar_lea.vmem (!%p448_p7), [#allocation5], %s2095_s30 }
  0x24   : > { %s470_s13 = scalar_lea.vmem (!%p448_p7), [#allocation6], %s2095_s30 }
  0x27   : > { %512 = sbr.rel (%p1655_p8) target bundleno = 49 (0x31), region = 178 }
  0x2c   : > { %vm514_vm0 = vcmask 1041408   ;;  %vm515_vm1 = vcmask 1043458   ;;  %vm517_vm2 = vcmask 1045508   ;;  %v1972_v7 = vmov 0.0  }
  0x2d   : > { %513 = vst [vmem:[#allocation2] sm:$0xff] %v1972_v7  ;;  %vm516_vm3 = vmor %vm515_vm1, %vm514_vm0  ;;  %vm519_vm4 = vcmask 523270  }
  0x2e   : > { %vm518_vm5 = vmor %vm517_vm2, %vm516_vm3 }
  0x2f   : > { %vm520_vm6 = vmor %vm519_vm4, %vm518_vm5 }
  0x30   : > { %521 = vst.msk [vmem:[#allocation2 + $0x8] sm:$0xff] %vm520_vm6, %v1972_v7 }
  0x31 PF: > { %v522_v8 = vld [vmem:[%s456_s11] sm:$0xff]  ;;  %v523_v9 = vld [vmem:[%s456_s11 + $0x8] sm:$0xff]  ;;  %v565_v10 = vlaneseq  ;;  %v1973_v16 = vmov 1983009808   ;;  %vm582_vm7 = vcmask 1041409   ;;  %vm584_vm8 = vcmask 1043459  }
  0x32   : > { %v524_v11 = vunpack.c.l.bf16 %v522_v8  ;;  %v525_v12 = vunpack.c.h.bf16 %v522_v8  ;;  %v526_v13 = vunpack.c.l.bf16 %v523_v9  ;;  %v527_v14 = vunpack.c.h.bf16 %v523_v9  ;;  %v593_v15 = vld [vmem:[%s463_s12] sm:$0xff]  ;;  %v594_v23 = vld [vmem:[%s463_s12 + $0x8] sm:$0xff]  ;;  %p1656_p9 = scmp.ne.s32.totalorder %s2052_s9, 1 }
  0x33   : > { %v563_v17 = vunpack.c.l.s4 %v1973_v16  ;;  %v566_v18 = vshrl.u32 %v565_v10, 7  ;;  %v595_v25 = vunpack.c.l.bf16 %v593_v15  ;;  %v596_v31 = vunpack.c.h.bf16 %v593_v15  ;;  %v658_v2 = vld [vmem:[%s470_s13] sm:$0xff] }
  0x34   : > { %v528_v19 = vrot.slane %v524_v11, 4  ;;  %v534_v20 = vrot.slane %v525_v12, 4  ;;  %v540_v21 = vrot.slane %v526_v13, 4  ;;  %v546_v22 = vrot.slane %v527_v14, 4 }
  0x35   : > { %v564_v24 = vunpack.c.0.s8 %v563_v17  ;;  %v597_v32 = vunpack.c.l.bf16 %v594_v23  ;;  %v598_v33 = vunpack.c.h.bf16 %v594_v23  ;;  %v599_v38 = vrot.slane %v595_v25, 4 }
  0x36   : > { %v529_v26 = vadd.f32 %v528_v19, %v524_v11  ;;  %v535_v27 = vadd.f32 %v534_v20, %v525_v12  ;;  %v541_v28 = vadd.f32 %v540_v21, %v526_v13  ;;  %v547_v29 = vadd.f32 %v546_v22, %v527_v14  ;;  %v659_v11 = vld [vmem:[%s470_s13 + $0x8] sm:$0xff] }
  0x37   : > { %v2101_v30 = vsub.s32 %v564_v24, %v566_v18  ;;  %v605_v39 = vrot.slane %v596_v31, 4  ;;  %v611_v40 = vrot.slane %v597_v32, 4  ;;  %v617_v41 = vrot.slane %v598_v33, 4 }
  0x38   : > { %v530_v34 = vrot.slane %v529_v26, 2  ;;  %v536_v35 = vrot.slane %v535_v27, 2  ;;  %v542_v36 = vrot.slane %v541_v28, 2  ;;  %v548_v37 = vrot.slane %v547_v29, 2 }
  0x39   : > { %v600_v46 = vadd.f32 %v599_v38, %v595_v25  ;;  %v606_v47 = vadd.f32 %v605_v39, %v596_v31  ;;  %v612_v48 = vadd.f32 %v611_v40, %v597_v32  ;;  %v618_v49 = vadd.f32 %v617_v41, %v598_v33  ;;  %v556_v39 = vld [vmem:[#allocation2] sm:$0xf] }
  0x3a   : > { %v531_v42 = vadd.f32 %v530_v34, %v529_v26  ;;  %v537_v43 = vadd.f32 %v536_v35, %v535_v27  ;;  %v543_v44 = vadd.f32 %v542_v36, %v541_v28  ;;  %v549_v45 = vadd.f32 %v548_v37, %v547_v29 }
  0x3b   : > { %v601_v54 = vrot.slane %v600_v46, 2  ;;  %v607_v55 = vrot.slane %v606_v47, 2  ;;  %v613_v56 = vrot.slane %v612_v48, 2  ;;  %v619_v57 = vrot.slane %v618_v49, 2 }
  0x3c   : > { %v532_v50 = vrot.slane %v531_v42, 1  ;;  %v538_v51 = vrot.slane %v537_v43, 1  ;;  %v544_v52 = vrot.slane %v543_v44, 1  ;;  %v550_v53 = vrot.slane %v549_v45, 1 }
  0x3d   : > { %vm586_vm9 = vcmask 1045509   ;;  %v602_v62 = vadd.f32 %v601_v54, %v600_v46  ;;  %v608_v63 = vadd.f32 %v607_v55, %v606_v47  ;;  %v614_v0 = vadd.f32 %v613_v56, %v612_v48 }
  0x3e   : > { %v533_v58 = vadd.f32 %v532_v50, %v531_v42  ;;  %v539_v59 = vadd.f32 %v538_v51, %v537_v43  ;;  %v545_v60 = vadd.f32 %v544_v52, %v543_v44  ;;  %v551_v61 = vadd.f32 %v550_v53, %v549_v45 }
  0x3f   : > { %v620_v1 = vadd.f32 %v619_v57, %v618_v49  ;;  %vm588_vm10 = vcmask 1047559   ;;  %v603_v7 = vrot.slane %v602_v62, 1  ;;  %v609_v8 = vrot.slane %v608_v63, 1 }
  0x40   : > { %v552_v3 = vmul.f32 0.0625, %v533_v58  ;;  %v553_v4 = vmul.f32 0.0625, %v539_v59  ;;  %v554_v5 = vmul.f32 0.0625, %v545_v60  ;;  %v555_v6 = vmul.f32 0.0625, %v551_v61  ;;  %v627_v60 = vld [vmem:[#allocation2 + $0x4] sm:$0xf] }
  0x41   : > { %v615_v9 = vrot.slane %v614_v0, 1  ;;  %v621_v10 = vrot.slane %v620_v1, 1  ;;  %v660_v14 = vunpack.c.l.bf16 %v658_v2  ;;  %v661_v15 = vunpack.c.h.bf16 %v658_v2 }
  0x42   : > { %v561_v12 = vcombine.low %v552_v3, %v553_v4  ;;  %v569_v13 = vcombine.low %v554_v5, %v555_v6  ;;  %v604_v16 = vadd.f32 %v603_v7, %v602_v62  ;;  %v610_v17 = vadd.f32 %v609_v8, %v608_v63 }
  0x43   : > { %v616_v18 = vadd.f32 %v615_v9, %v614_v0  ;;  %v622_v19 = vadd.f32 %v621_v10, %v620_v1  ;;  %v662_v22 = vunpack.c.l.bf16 %v659_v11  ;;  %v663_v23 = vunpack.c.h.bf16 %v659_v11 }
  0x44   : > { %v568_v20 = vrot.slane %v561_v12, %v2101_v30  ;;  %v576_v21 = vrot.slane %v569_v13, %v2101_v30  ;;  %v623_v24 = vmul.f32 0.083333336, %v604_v16  ;;  %v624_v25 = vmul.f32 0.083333336, %v610_v17 }
  0x45   : > { %v625_v26 = vmul.f32 0.083333336, %v616_v18  ;;  %v626_v28 = vmul.f32 0.083333336, %v622_v19  ;;  %v664_v29 = vrot.slane %v660_v14, 4  ;;  %vm670_vm11 = vcmask 523264  }
  0x46   : > { %v581_v27 = vrot.slane %v576_v21, 7  ;;  %v632_v31 = vcombine.low %v623_v24, %v624_v25  ;;  %v671_v32 = vsel %vm670_vm11, %v661_v15, 0.0  ;;  %v678_v33 = vrot.slane %v662_v22, 4  ;;  %v695_v19 = vld [vmem:[#allocation2 + $0xc] sm:$0xf] }
  0x47   : > { %v684_v34 = vsel %vm670_vm11, %v663_v23, 0.0  ;;  %v640_v36 = vcombine.low %v625_v26, %v626_v28  ;;  %v665_v37 = vadd.f32 %v664_v29, %v660_v14  ;;  %v672_v38 = vrot.slane %v671_v32, 4 }
  0x48   : > { %v583_v35 = vsel %vm582_vm7, %v581_v27, %v568_v20  ;;  %v639_v41 = vrot.slane %v632_v31, %v2101_v30  ;;  %v679_v42 = vadd.f32 %v678_v33, %v662_v22  ;;  %v685_v43 = vrot.slane %v684_v34, 4 }
  0x49   : > { %v585_v40 = vsel %vm584_vm8, %v581_v27, %v583_v35  ;;  %v647_v45 = vrot.slane %v640_v36, %v2101_v30  ;;  %v666_v46 = vrot.slane %v665_v37, 2  ;;  %v673_v47 = vadd.f32 %v672_v38, %v671_v32 }
  0x4a   : > { %v587_v44 = vsel %vm586_vm9, %v581_v27, %v585_v40  ;;  %v680_v49 = vrot.slane %v679_v42, 2  ;;  %v686_v50 = vadd.f32 %v685_v43, %v684_v34  ;;  %vm725_vm12 = vcmask 1041408  }
  0x4b   : > { %v589_v48 = vsel %vm588_vm10, %v581_v27, %v587_v44  ;;  %v650_v52 = vrot.slane %v647_v45, 7  ;;  %v667_v53 = vadd.f32 %v666_v46, %v665_v37  ;;  %v674_v54 = vrot.slane %v673_v47, 2 }
  0x4c   : > { %v591_v51 = vadd.f32 %v589_v48, %v556_v39  ;;  %v681_v55 = vadd.f32 %v680_v49, %v679_v42  ;;  %v687_v56 = vrot.slane %v686_v50, 2  ;;  %vm726_vm13 = vcmask 519170  }
  0x4d   : > { %v651_v57 = vsel %vm582_vm7, %v650_v52, %v639_v41  ;;  %v668_v58 = vrot.slane %v667_v53, 1  ;;  %v675_v59 = vadd.f32 %v674_v54, %v673_v47  ;;  %vm727_vm14 = vmor %vm726_vm13, %vm725_vm12 }
  0x4e   : > { %592 = vst [vmem:[#allocation2] sm:$0xf] %v591_v51  ;;  %v652_v61 = vsel %vm584_vm8, %v650_v52, %v651_v57  ;;  %v682_v62 = vrot.slane %v681_v55, 1  ;;  %v688_v63 = vadd.f32 %v687_v56, %v686_v50 }
  0x4f   : > { %v653_v0 = vsel %vm586_vm9, %v650_v52, %v652_v61  ;;  %v669_v1 = vadd.f32 %v668_v58, %v667_v53  ;;  %v676_v2 = vrot.slane %v675_v59, 1 }
  0x50   : > { %v654_v3 = vsel %vm588_vm10, %v650_v52, %v653_v0  ;;  %v683_v4 = vadd.f32 %v682_v62, %v681_v55  ;;  %v689_v5 = vrot.slane %v688_v63, 1 }
  0x51   : > { %v656_v6 = vadd.f32 %v654_v3, %v627_v60  ;;  %v677_v7 = vadd.f32 %v676_v2, %v675_v59  ;;  %v691_v8 = vmul.f32 0.125, %v669_v1 }
  0x52   : > { %v690_v9 = vadd.f32 %v689_v5, %v688_v63  ;;  %v693_v10 = vmul.f32 0.125, %v683_v4 }
  0x53   : > { %657 = vst [vmem:[#allocation2 + $0x4] sm:$0xf] %v656_v6  ;;  %v692_v11 = vmul.f32 0.125, %v677_v7 }
  0x54   : > { %v694_v12 = vmul.f32 0.125, %v690_v9 }
  0x55   : > { %v700_v13 = vcombine.low %v691_v8, %v692_v11 }
  0x56   : > { %v708_v14 = vcombine.low %v693_v10, %v694_v12 }
  0x57   : > { %v707_v15 = vrot.slane %v700_v13, %v2101_v30 }
  0x58   : > { %v715_v16 = vrot.slane %v708_v14, %v2101_v30 }
  0x5a   : > { %v718_v17 = vrot.slane %v715_v16, 7 }
  0x5c   : > { %v719_v18 = vsel %vm582_vm7, %v718_v17, %v707_v15 }
  0x5d   : > { %v720_v20 = vsel %vm584_vm8, %v718_v17, %v719_v18 }
  0x5e   : > { %v721_v21 = vsel %vm586_vm9, %v718_v17, %v720_v20  ;;  %732 = sbr.rel (%p1656_p9) target bundleno = 846 (0x34e), region = 182 }
  0x5f   : > { %v722_v22 = vsel %vm588_vm10, %v718_v17, %v721_v21 }
  0x60   : > { %v724_v23 = vadd.f32 %v722_v22, %v695_v19 }
  0x62   : > { %728 = vst.msk [vmem:[#allocation2 + $0xc] sm:$0xf] %vm727_vm14, %v724_v23 }
  0x63   : > { %v1854_v24 = vld [vmem:[%s2377_s4 + $0x78] sm:$0xff]   ;;  %v1974_v26 = vmov 0   ;;  %v1858_v29 = vld [vmem:[%s2377_s4 + $0x70] sm:$0xff]   ;;  %v1862_v34 = vld [vmem:[%s2377_s4 + $0x68] sm:$0xff]   ;;  %vm1976_vm15 = vmmov 0   ;;  %vm1533_vm0 = vcmask 517120  }
  0x64   : > { %v1855_v25 = vld [vmem:[%s2377_s4 + $0xf8] sm:$0xff]   ;;  %1853 = vset.pattern.permute.xlu0 %v1974_v26  ;;  %1734 = vmatprep.subr.bf16.mxu0 %v1854_v24  ;;  %v1859_v31 = vld [vmem:[%s2377_s4 + $0xf0] sm:$0xff]   ;;  %v1863_v35 = vld [vmem:[%s2377_s4 + $0xe8] sm:$0xff]  }
  0x65   : > { %v1856_v27 = vld [vmem:[%s2377_s4 + $0x38] sm:$0xff]   ;;  %1756 = vmatprep.subr.bf16.mxu1 %v1855_v25  ;;  %v1860_v32 = vld [vmem:[%s2377_s4 + $0x30] sm:$0xff]   ;;  %v1864_v36 = vld [vmem:[%s2377_s4 + $0x28] sm:$0xff]  }
  0x66   : > { %v1857_v28 = vld [vmem:[%s2377_s4 + $0xb8] sm:$0xff]   ;;  %1735 = vmatpush3.bf16.msra.mxu0 %v1856_v27  ;;  %v1861_v33 = vld [vmem:[%s2377_s4 + $0xb0] sm:$0xff]   ;;  %v1865_v37 = vld [vmem:[%s2377_s4 + $0xa8] sm:$0xff]  }
  0x67   : > { %1757 = vmatpush3.bf16.msra.mxu1 %v1857_v28  ;;  %1736 = vmatprep.subr.bf16.mxu0 %v1858_v29  ;;  %v1866_v38 = vld [vmem:[%s2377_s4 + $0x60] sm:$0xff]   ;;  %v1870_v42 = vld [vmem:[%s2377_s4 + $0x58] sm:$0xff]   ;;  %v1874_v46 = vld [vmem:[%s2377_s4 + $0x50] sm:$0xff]  }
  0x68   : > { %1758 = vmatprep.subr.bf16.mxu1 %v1859_v31  ;;  %v1867_v39 = vld [vmem:[%s2377_s4 + $0xe0] sm:$0xff]   ;;  %v1871_v43 = vld [vmem:[%s2377_s4 + $0xd8] sm:$0xff]   ;;  %v1875_v47 = vld [vmem:[%s2377_s4 + $0xd0] sm:$0xff]  }
  0x69   : > { %v1868_v40 = vld [vmem:[%s2377_s4 + $0x20] sm:$0xff]   ;;  %v1872_v44 = vld [vmem:[%s2377_s4 + $0x18] sm:$0xff]   ;;  %v1876_v48 = vld [vmem:[%s2377_s4 + $0x10] sm:$0xff]  }
  0x6a   : > { %1737 = vmatpush3.bf16.msra.mxu0 %v1860_v32  ;;  %v1869_v41 = vld [vmem:[%s2377_s4 + $0xa0] sm:$0xff]   ;;  %v1873_v45 = vld [vmem:[%s2377_s4 + $0x98] sm:$0xff]   ;;  %v1877_v49 = vld [vmem:[%s2377_s4 + $0x90] sm:$0xff]  }
  0x6b   : > { %1759 = vmatpush3.bf16.msra.mxu1 %v1861_v33  ;;  %1738 = vmatprep.subr.bf16.mxu0 %v1862_v34  ;;  %v1878_v50 = vld [vmem:[%s2377_s4 + $0x48] sm:$0xff]   ;;  %v1882_v54 = vld [vmem:[%s2377_s4 + $0x40] sm:$0xff]   ;;  %v1887_v61 = vld [vmem:[%s2377_s4 + $0x178] sm:$0xff]  }
  0x6c   : > { %1760 = vmatprep.subr.bf16.mxu1 %v1863_v35  ;;  %v1879_v51 = vld [vmem:[%s2377_s4 + $0xc8] sm:$0xff]   ;;  %v1883_v55 = vld [vmem:[%s2377_s4 + $0xc0] sm:$0xff]   ;;  %v1888_v3 = vld [vmem:[%s2377_s4 + $0x138] sm:$0xff]  }
  0x6d   : > { %v1880_v52 = vld [vmem:[%s2377_s4 + $0x8] sm:$0xff]   ;;  %v1884_v56 = vld [vmem:[%s2377_s4] sm:$0xff]   ;;  %v1890_v5 = vld [vmem:[%s2377_s4 + $0x170] sm:$0xff]  }
  0x6e   : > { %1739 = vmatpush3.bf16.msra.mxu0 %v1864_v36  ;;  %v1881_v53 = vld [vmem:[%s2377_s4 + $0x88] sm:$0xff]   ;;  %v1885_v57 = vld [vmem:[%s2377_s4 + $0x80] sm:$0xff]   ;;  %v1889_v7 = vld [vmem:[%s2377_s4 + $0x1b8] sm:$0xff]  }
  0x6f   : > { %1761 = vmatpush3.bf16.msra.mxu1 %v1865_v37  ;;  %1740 = vmatprep.subr.bf16.mxu0 %v1866_v38  ;;  %v736_v58 = vld [vmem:[#allocation2] sm:$0xff]  ;;  %v1891_v8 = vld [vmem:[%s2377_s4 + $0x130] sm:$0xff]   ;;  %v1893_v9 = vld [vmem:[%s2377_s4 + $0x168] sm:$0xff]  }
  0x70   : > { %1762 = vmatprep.subr.bf16.mxu1 %v1867_v39  ;;  %v747_v59 = vrot.slane %v736_v58, %v2101_v30  ;;  %v740_v60 = vcombine.high %v736_v58, %v736_v58  ;;  %v1892_v10 = vld [vmem:[%s2377_s4 + $0x1b0] sm:$0xff]   ;;  %v1894_v11 = vld [vmem:[%s2377_s4 + $0x128] sm:$0xff]   ;;  %v1896_v12 = vld [vmem:[%s2377_s4 + $0x160] sm:$0xff]  }
  0x71   : > { %v1895_v13 = vld [vmem:[%s2377_s4 + $0x1a8] sm:$0xff]   ;;  %v1897_v14 = vld [vmem:[%s2377_s4 + $0x120] sm:$0xff]   ;;  %v1899_v15 = vld [vmem:[%s2377_s4 + $0x158] sm:$0xff]  }
  0x72   : > { %1741 = vmatpush3.bf16.msra.mxu0 %v1868_v40  ;;  %v755_v62 = vcombine.high %v747_v59, %v747_v59  ;;  %v754_v63 = vrot.slane %v740_v60, %v2101_v30  ;;  %v782_v0 = vpack.c.bf16 %v747_v59, %v747_v59  ;;  %v1898_v16 = vld [vmem:[%s2377_s4 + $0x1a0] sm:$0xff]   ;;  %v1900_v17 = vld [vmem:[%s2377_s4 + $0x118] sm:$0xff]   ;;  %v1902_v18 = vld [vmem:[%s2377_s4 + $0x150] sm:$0xff]  }
  0x73   : > { %1763 = vmatpush3.bf16.msra.mxu1 %v1869_v41  ;;  %1742 = vmatprep.subr.bf16.mxu0 %v1870_v42  ;;  %v1901_v19 = vld [vmem:[%s2377_s4 + $0x198] sm:$0xff]   ;;  %v1903_v20 = vld [vmem:[%s2377_s4 + $0x110] sm:$0xff]   ;;  %v733_v21 = vld [vmem:[%s2376_s3] sm:$0x3] }
  0x74   : > { %1764 = vmatprep.subr.bf16.mxu1 %v1871_v43  ;;  %v783_v1 = vpack.c.bf16 %v755_v62, %v755_v62  ;;  %v756_v2 = vcombine.high %v754_v63, %v754_v63  ;;  %v784_v4 = vpack.c.bf16 %v754_v63, %v754_v63  ;;  %v1904_v22 = vld [vmem:[%s2377_s4 + $0x190] sm:$0xff]   ;;  %v734_v23 = vunpack.c.l.bf16 %v733_v21  ;;  %v1905_v24 = vld [vmem:[%s2377_s4 + $0x148] sm:$0xff]   ;;  %v1908_v27 = vld [vmem:[%s2377_s4 + $0x140] sm:$0xff]  }
  0x75   : > { %v1906_v25 = vld [vmem:[%s2377_s4 + $0x108] sm:$0xff]   ;;  %v1909_v29 = vld [vmem:[%s2377_s4 + $0x100] sm:$0xff]   ;;  %v1911_v39 = vld [vmem:[%s2377_s4 + $0x1d8] sm:$0xff]  }
  0x76   : > { %1743 = vmatpush3.bf16.msra.mxu0 %v1872_v44  ;;  %1312 = vmatprep.mubr.bf16.mxu0 %v783_v1  ;;  %v785_v6 = vpack.c.bf16 %v756_v2, %v756_v2  ;;  %735 = vst [vmem:[#allocation2 + $0x8] sm:$0xf] %v734_v23  ;;  %v1907_v28 = vld [vmem:[%s2377_s4 + $0x188] sm:$0xff]   ;;  %v1910_v32 = vld [vmem:[%s2377_s4 + $0x180] sm:$0xff]   ;;  %v1912_v42 = vld [vmem:[%s2377_s4 + $0x1d0] sm:$0xff]  }
  0x77   : > { %1765 = vmatpush3.bf16.msra.mxu1 %v1873_v45  ;;  %1744 = vmatprep.subr.bf16.mxu0 %v1874_v46  ;;  %v1914_v43 = vld [vmem:[%s2377_s4 + $0x1c0] sm:$0xff]   ;;  %v1975_v45 = vmov 0.0   ;;  %v1916_v46 = vld [vmem:[%s2379_s6 + $0x18] sm:$0xff]   ;;  %v1726_v21 = vld [vmem:[#allocation3] ss:$0 sm:$0xff] }
  0x78   : > { %1766 = vmatprep.subr.bf16.mxu1 %v1875_v47  ;;  %1352 = vmatprep.mubr.bf16.mxu1 %v785_v6  ;;  %v1917_v47 = vld [vmem:[%s2379_s6 + $0x10] sm:$0xff]  }
  0x7a   : > { %1745 = vmatpush3.bf16.msra.mxu0 %v1876_v48  ;;  %v1919_v48 = vld [vmem:[%s2379_s6] sm:$0xff]  }
  0x7b   : > { %1767 = vmatpush3.bf16.msra.mxu1 %v1877_v49  ;;  %1746 = vmatprep.subr.bf16.mxu0 %v1878_v50 }
  0x7c   : > { %1768 = vmatprep.subr.bf16.mxu1 %v1879_v51 }
  0x7d   : > { %v737_v31 = vld [vmem:[#allocation2 + $0x8] sm:$0xff] }
  0x7e   : > { %1747 = vmatpush3.bf16.msra.mxu0 %v1880_v52  ;;  %v764_v33 = vrot.slane %v737_v31, %v2101_v30  ;;  %v757_v34 = vcombine.high %v737_v31, %v737_v31 }
  0x7f   : > { %1769 = vmatpush3.bf16.msra.mxu1 %v1881_v53  ;;  %1748 = vmatprep.subr.bf16.mxu0 %v1882_v54 }
  0x80   : > { %1770 = vmatprep.subr.bf16.mxu1 %v1883_v55  ;;  %v772_v35 = vcombine.high %v764_v33, %v764_v33  ;;  %v771_v36 = vrot.slane %v757_v34, %v2101_v30  ;;  %v786_v37 = vpack.c.bf16 %v764_v33, %v764_v33  ;;  %v1913_v30 = vld [vmem:[%s2377_s4 + $0x1c8] sm:$0xff]  }
  0x82   : > { %1749 = vmatpush3.bf16.msra.mxu0 %v1884_v56  ;;  %v787_v38 = vpack.c.bf16 %v772_v35, %v772_v35  ;;  %v773_v40 = vcombine.high %v771_v36, %v771_v36  ;;  %v788_v44 = vpack.c.bf16 %v771_v36, %v771_v36 }
  0x83   : > { %1771 = vmatpush3.bf16.msra.mxu1 %v1885_v57  ;;  %1778 = vmatprep.subr.bf16.mxu0 %v1887_v61  ;;  %v1657_v61 = vld [vmem:[%s2378_s5] ss:$0 sm:$0xff] }
  0x84   : > { %1400 = vmatprep.subr.bf16.mxu1 %v1974_v26  ;;  %v789_v41 = vpack.c.bf16 %v773_v40, %v773_v40 }
  0x85   : > { %1313 = vmatmul.mubr.bf16.vlgmr.msra.gmra.mxu0 %v782_v0 }
  0x86   : > { %1779 = vmatpush3.bf16.msra.mxu0 %v1888_v3  ;;  %1353 = vmatmul.mubr.bf16.vlgmr.msra.gmra.mxu1 %v784_v4 }
  0x87   : > { %1780 = vmatprep.subr.bf16.mxu0 %v1890_v5  ;;  %1401 = vmatpush1.bf16.msra.mxu1 %v1889_v7 }
  0x88   : > { %1402 = vmatprep.subr.bf16.mxu1 %v1974_v26  ;;  %1392 = vmatprep.mubr.bf16.mxu0 %v787_v38 }
  0x89   : > { %1718 = vmatprep.mubr.msk.bf16.mxu1 %vm670_vm11, %v789_v41 }
  0x8a   : > { %1781 = vmatpush3.bf16.msra.mxu0 %v1891_v8 }
  0x8b   : > { %1782 = vmatprep.subr.bf16.mxu0 %v1893_v9  ;;  %1403 = vmatpush1.bf16.msra.mxu1 %v1892_v10 }
  0x8c   : > { %1404 = vmatprep.subr.bf16.mxu1 %v1974_v26 }
  0x8e   : > { %1783 = vmatpush3.bf16.msra.mxu0 %v1894_v11  ;;  %v1719_v11 = vld [vmem:[%s2380_s7] ss:$0 sm:$0xff] }
  0x8f   : > { %1784 = vmatprep.subr.bf16.mxu0 %v1896_v12  ;;  %1405 = vmatpush1.bf16.msra.mxu1 %v1895_v13 }
  0x90   : > { %1406 = vmatprep.subr.bf16.mxu1 %v1974_v26 }
  0x92   : > { %1785 = vmatpush3.bf16.msra.mxu0 %v1897_v14 }
  0x93   : > { %1786 = vmatprep.subr.bf16.mxu0 %v1899_v15  ;;  %1407 = vmatpush1.bf16.msra.mxu1 %v1898_v16  ;;  %v1725_v15 = vld [vmem:[%s2381_s8] ss:$0 sm:$0xff] }
  0x94   : > { %1408 = vmatprep.subr.bf16.mxu1 %v1974_v26 }
  0x96   : > { %1787 = vmatpush3.bf16.msra.mxu0 %v1900_v17 }
  0x97   : > { %1788 = vmatprep.subr.bf16.mxu0 %v1902_v18  ;;  %1409 = vmatpush1.bf16.msra.mxu1 %v1901_v19 }
  0x98   : > { %1410 = vmatprep.subr.bf16.mxu1 %v1974_v26 }
  0x9a   : > { %1789 = vmatpush3.bf16.msra.mxu0 %v1903_v20 }
  0x9b   : > { %1790 = vmatprep.subr.bf16.mxu0 %v1905_v24  ;;  %1411 = vmatpush1.bf16.msra.mxu1 %v1904_v22 }
  0x9c   : > { %1412 = vmatprep.subr.bf16.mxu1 %v1974_v26 }
  0x9e   : > { %1791 = vmatpush3.bf16.msra.mxu0 %v1906_v25 }
  0x9f   : > { %1792 = vmatprep.subr.bf16.mxu0 %v1908_v27  ;;  %1413 = vmatpush1.bf16.msra.mxu1 %v1907_v28 }
  0xa0   : > { %1414 = vmatprep.subr.bf16.mxu1 %v1974_v26 }
  0xa2   : > { %1793 = vmatpush3.bf16.msra.mxu0 %v1909_v29 }
  0xa3   : > { %1415 = vmatpush1.bf16.msra.mxu1 %v1910_v32  ;;  %1805 = vmatprep.subr.bf16.mxu0 %v1975_v45 }
  0xa4   : > { %1424 = vmatprep.subr.bf16.mxu1 %v1974_v26 }
  0xa5   : > { %1393 = vmatmul.mubr.bf16.vlgmr.msra.gmra.mxu0 %v786_v37 }
  0xa6   : > { %1806 = vmatpush3.bf16.msra.mxu0 %v1916_v46  ;;  %1813 = vmatprep.mubr.msk.bf16.mxu0 %vm1976_vm15, %v1975_v45 }
  0xa7   : > { %1425 = vmatpush2.bf16.msra.mxu1 %v1911_v39  ;;  %1807 = vmatprep.subr.bf16.mxu0 %v1975_v45 }
  0xa8   : > { %1426 = vmatprep.subr.bf16.mxu1 %v1974_v26 }
  0xaa   : > { %1808 = vmatpush3.bf16.msra.mxu0 %v1917_v47 }
  0xab   : > { %1427 = vmatpush2.bf16.msra.mxu1 %v1912_v42  ;;  %1809 = vmatprep.subr.bf16.mxu0 %v1975_v45 }
  0xac   : > { %1428 = vmatprep.subr.bf16.mxu1 %v1974_v26 }
  0xaf   : > { %1429 = vmatpush2.bf16.msra.mxu1 %v1913_v30 }
  0xb0   : > { %1430 = vmatprep.subr.bf16.mxu1 %v1974_v26  ;;  %v1918_v26 = vld [vmem:[%s2379_s6 + $0x8] sm:$0xff]  }
  0xb1   : > { %1810 = vmatpush3.bf16.msra.mxu0 %v1918_v26 }
  0xb2   : > { %1811 = vmatprep.subr.bf16.mxu0 %v1975_v45 }
  0xb3   : > { %1431 = vmatpush2.bf16.msra.mxu1 %v1914_v43 }
  0xb5   : > { %1812 = vmatpush3.bf16.msra.mxu0 %v1919_v48 }
  0xb6   : > { %1433 = vmatmul.mubr.bf16.vlgmr.msra.gmra.mxu1 %v788_v44 }
 0x145   : > { %v1750_v49 = vpop.f32.mrf.mxu0 }
 0x146   : > { %v1772_v50 = vpop.f32.mrf.mxu1 }
 0x147   : > { %v1751_v51 = vpop.f32.mrf.mxu0 }
 0x148   : > { %v1773_v52 = vpop.f32.mrf.mxu1  ;;  %v1752_v60 = vadd.f32 %v1751_v51, %v1750_v49 }
 0x149   : > { %v1753_v53 = vpop.f32.mrf.mxu0  ;;  %v1774_v0 = vadd.f32 %v1773_v52, %v1772_v50 }
 0x14a   : > { %v1775_v54 = vpop.f32.mrf.mxu1  ;;  %v1315_v63 = vadd.f32 %v1752_v60, %v1657_v61 }
 0x14b   : > { %v1754_v55 = vpop.f32.mrf.mxu0 }
 0x14c   : > { %v1776_v56 = vpop.f32.mrf.mxu1  ;;  %v1355_v2 = vadd.f32 %v1774_v0, %v1315_v63 }
 0x165   : > { %v1794_v57 = vpop.f32.mrf.mxu0 }
 0x167   : > { %v1795_v58 = vpop.f32.mrf.mxu0 }
 0x168   : > { %v1796_v1 = vadd.f32 %v1795_v58, %v1794_v57 }
 0x169   : > { %v1797_v59 = vpop.f32.mrf.mxu0 }
 0x16a   : > { %v1395_v3 = vadd.f32 %v1796_v1, %v1355_v2 }
 0x16b   : > { %v1798_v62 = vpop.f32.mrf.mxu0 }
 0x176   : > { %v1434_v4 = vpop.f32.mrf.mxu1 }
 0x177   : > { %v1435_v5 = vadd.f32 %v1434_v4, %v1395_v3 }
 0x178   : > { %v1436_v6 = vpop.f32.mrf.mxu1 }
 0x179   : > { %v1440_v7 = vmax.f32 %v1435_v5, 0.0 }
 0x17a   : > { %v1437_v8 = vpop.f32.mrf.mxu1 }
 0x17b   : > { %v1441_v9 = vpack.c.bf16 %v1440_v7, %v1440_v7 }
 0x17c   : > { %v1438_v10 = vpop.f32.mrf.mxu1 }
 0x17d   : > { %1814 = vmatmul.mubr.msk.bf16.vlgmr.msra.gmra.mxu0 %vm670_vm11, %v1441_v9 }
 0x23d   : > { %v1518_v12 = vpop.f32.mrf.mxu0 }
 0x23e   : > { %v1519_v13 = vadd.f32 %v1719_v11, %v1518_v12 }
 0x23f   : > { %v1815_v14 = vpop.f32.mrf.mxu0 }
 0x240   : > { %v1524_v16 = vmax.f32 %v1519_v13, 0.0 }
 0x241   : > { %v1521_v17 = vpop.f32.mrf.mxu0 }
 0x242   : > { %v1532_v18 = vmul.f32 %v1725_v15, %v1524_v16 }
 0x243   : > { %v1816_v19 = vpop.f32.mrf.mxu0 }
 0x244   : > { %v1534_v20 = vsel %vm1533_vm0, %v1532_v18, 0.0 }
 0x245   : > { %1535 = vadd.xlane.f32.xlu0 %v1534_v20 }
 0x2ce   : > { %v1536_v22 = vpop.xlane.xlu0 %1535 }
 0x2cf   : > { %v1544_v23 = vadd.f32 %v1726_v21, %v1536_v22 }
 0x2d1   : > { %1547 = vperm.xlu0 %1853, %v1544_v23  }
 0x34c   : > { %v1548_v24 = vpop.permute.xlu0 %1547 }
 0x34d   : > { %1550 = vst [vmem:[#allocation7] sm:$0x3] %v1548_v24 }
 0x34e PF: > { %p1821_p10 = scmp.eq.s32.totalorder %s2052_s9, 1  ;;  %s1977_s15 = smov [#allocation7]  }
 0x34f   : > { %s1558_s17 = sshll.u32 %s1977_s15, 4  ;;  %s1559_s17 = int_to_ptr.vmem [resolvable:$true] %s1558_s17 }
 0x350   : > { %s1920_s14 = scalar_lea.vmem %s1559_s17, 32  ;;  %p1927_p0 = scmp.lt.s32.totalorder %s1559_s17, %s1559_s17 }
 0x351   : > { %p1921_p11 = scmp.ne.s32.totalorder %s1559_s17, %s1920_s14  ;;  %p1928_p1 = scmp.lt.s32.totalorder %s1920_s14, %s1920_s14 }
 0x353   : > { %p1922_p12 = pnand %p1921_p11, %p1821_p10  ;;  %p1929_p2 = por %p1928_p1, %p1927_p0 }
 0x355   : > { %p1923_p13 = pneg %p1922_p12 }
 0x357   : > { %p1930_p3 = pnand %p1929_p2, %p1923_p13 }
 0x359   : > { %1933 = shalt.err (!%p1930_p3)
}
 0x35a   : > { %1818 = dma.vmem_to_hbm [thread:$0]  (%p1821_p10), %s1559_s17, 32, %s2383_s10, [#allocation8]  }
 0x35b   : > { %1957 = dma.done.wait (%p1821_p10), [#allocation8], 32  }
 0x35c   : > { %1959 = vsyncadd (%p1821_p10), [#allocation8], 4294967264 }
 0x35d PF: > { %p20_p4 = scmp.ge.s32.totalorder %s2055_s18, 4   ;;  %s2385_s15 = smov %s1966_s16 }
 0x35e   : > { %s2386_s16 = smov %s2064_s21  ;;  %s2387_s17 = smov %s2055_s18 }
 0x35f   :  { %22 = sbr.rel (!%p20_p4) target bundleno = 5 (0x5), region = 230 }
 0x364   :  { %1571 = vsyncpa [#allocation8], 1 }
 0x365   :  { %1573 = vsyncpa [#allocation8 + $0x1], 1 }

</bundles_post_ra>
